<compile_context>
chip_gen: v7x
topology: tpu7x:2x2x1
jax: 0.10.0
libtpu: 0.0.40
codegen_flags: <defaults>
</compile_context>

<pallas_src>
import math

import jax
import jax.numpy as jnp
from jax.experimental import pallas as pl
from jax.experimental.pallas import tpu as pltpu


def _dyn_tanh_kernel(x_ref, p_ref, o_ref):
    # x_ref: (tile_rows, D_eff) input dtype; p_ref: (3, D_eff) f32 [alpha; gamma; beta]
    x = x_ref[...].astype(jnp.float32)
    alpha = p_ref[0:1, :]                      # (1, D_eff), broadcasts over rows
    gamma = p_ref[1:2, :]
    beta = p_ref[2:3, :]
    y = jnp.tanh(x * alpha) * gamma + beta     # VPU mul/fma + EUP tanh, all f32
    o_ref[...] = y.astype(o_ref.dtype)


def _round_up(x, m):
    return ((x + m - 1) // m) * m


_LANE_CAP = 8192  # cap on folded last dim; wider buys nothing


def _fold_factor(R, D):
    """Fold factor k so the folded last dim k*D is a multiple of 128 (unmasked
    `vst` instead of `vst.msk`).  Prefers a k that divides R (no padding);
    otherwise returns the minimal fold m and the caller pads R up to a multiple
    of m.  Returns 1 when D is already a multiple of 128 or folding is not
    worthwhile."""
    if D % 128 == 0 or R <= 1:
        return 1
    m = 128 // math.gcd(128, D)                # smallest k with (k*D) % 128 == 0
    if m * D > _LANE_CAP:
        return 1
    best_div, k = 0, m
    while k <= R and k * D <= _LANE_CAP:
        if R % k == 0:
            best_div = k
        k *= 2
    if best_div:
        return best_div
    return m                                   # pad path: caller pads R -> multiple of m


def _vmem_capacity_bytes():
    try:
        return int(pltpu.get_tpu_info().vmem_capacity_bytes)
    except Exception:
        return 64 * 1024 * 1024                # conservative (v7x-sized) default


def _make_in_spec(block_shape, index_map, deep):
    if not deep:
        return pl.BlockSpec(block_shape, index_map)
    try:
        return pl.BlockSpec(block_shape, index_map, pipeline_mode=pl.Buffered(3))
    except Exception:                          # older jax without pipeline_mode
        return pl.BlockSpec(block_shape, index_map)


def dyn_tanh(x, alpha, gamma=None, beta=None):
    """x: (..., D); alpha/gamma/beta: (D,). Returns same shape/dtype as x."""
    orig_shape = x.shape
    D = orig_shape[-1]
    if gamma is None:                          # elementwise_affine=False case
        gamma = jnp.ones((D,), dtype=jnp.float32)
    if beta is None:
        beta = jnp.zeros((D,), dtype=jnp.float32)

    R = x.size // D
    k = _fold_factor(R, D)
    R_pad = _round_up(R, k)
    x2 = x.reshape(R, D)
    if R_pad != R:
        # Rare path (awkward R with non-lane-dense D): a small row pad buys
        # lane-dense stores for the whole kernel.
        x2 = jnp.pad(x2, ((0, R_pad - R), (0, 0)))
    R_eff, D_eff = R_pad // k, k * D
    x2 = x2.reshape(R_eff, D_eff)

    # Stacked (and lane-folded) parameters, one resident (3, D_eff) f32 block.
    p = jnp.stack([alpha, gamma, beta]).astype(jnp.float32)
    if k > 1:
        p = jnp.tile(p, (1, k))

    # --- tile sizing: generation-aware, byte-based ---------------------------
    dtype_bytes = jnp.dtype(x.dtype).itemsize
    row_align = max(8, 32 // dtype_bytes)      # sublane multiple: 8 f32 / 16 bf16
    row_bytes = max(D_eff * dtype_bytes, 1)

    vmem_cap = _vmem_capacity_bytes()
    buf_budget = int(vmem_cap * 0.4)           # ~51 MiB on 128 MiB parts, ~25 MiB on v7x
    vmem_ceiling = min(int(vmem_cap * 0.8), 100 * 1024 * 1024)

    # Biggest row tile whose double-buffered in+out footprint fits the budget.
    max_rows = max(row_align, (buf_budget // 4) // row_bytes)
    tile_rows = max(row_align, (max_rows // row_align) * row_align)

    # Never collapse to a single block when splittable: >=2 blocks (restores
    # pipelining + v7x 2-TensorCore sharding of the "parallel" axis), prefer
    # >=4, but don't shrink tiles below ~1 MiB just to over-split.
    if R_eff >= 2 * row_align:
        min_rows_1mib = _round_up(pl.cdiv(1 << 20, row_bytes), row_align)
        cap = max(_round_up(pl.cdiv(R_eff, 4), row_align), min_rows_1mib)
        cap = min(cap, _round_up(pl.cdiv(R_eff, 2), row_align))
        tile_rows = min(tile_rows, cap)
    if tile_rows >= R_eff:
        tile_rows = R_eff                      # tiny input: single full-dim block is legal

    grid_rows = pl.cdiv(R_eff, tile_rows)      # ragged last block handled by Pallas

    # If tiles are small anyway, deepen the input pipeline instead of shrinking.
    deep = (tile_rows * row_bytes < (2 << 20)) and grid_rows >= 3
    n_in_bufs = 3 if deep else 2

    buf_bytes = (n_in_bufs + 2) * tile_rows * row_bytes + 2 * 3 * D_eff * 4
    vmem_limit = int(max(32 * 1024 * 1024, min(buf_bytes + (8 << 20), vmem_ceiling)))

    out = pl.pallas_call(
        _dyn_tanh_kernel,
        out_shape=jax.ShapeDtypeStruct((R_eff, D_eff), x.dtype),
        grid_spec=pltpu.PrefetchScalarGridSpec(
            num_scalar_prefetch=0,
            grid=(grid_rows,),
            in_specs=[
                _make_in_spec((tile_rows, D_eff), lambda i: (i, 0), deep),
                pl.BlockSpec((3, D_eff), lambda i: (0, 0)),
            ],
            out_specs=pl.BlockSpec((tile_rows, D_eff), lambda i: (i, 0)),
        ),
        compiler_params=pltpu.CompilerParams(
            dimension_semantics=("parallel",),   # v7x: shard row tiles over 2 TCs
            vmem_limit_bytes=vmem_limit,
        ),
    )(x2, p)

    out = out.reshape(R_pad, D)
    if R_pad != R:
        out = out[:R]
    return out.reshape(orig_shape)


if __name__ == "__main__":
    key = jax.random.PRNGKey(0)
    batch, seq, hidden = 2, 8, 32

    x = jax.random.normal(key, (batch, seq, hidden), dtype=jnp.float32)

    # Deterministic parameter init matching DynTanh.__init__:
    alpha = jnp.full((hidden,), 0.5, dtype=jnp.float32)   # torch.full((d,), 0.5)
    gamma = jnp.ones((hidden,), dtype=jnp.float32)        # torch.ones(d)
    beta = jnp.zeros((hidden,), dtype=jnp.float32)        # torch.zeros(d)

    y = dyn_tanh(x, alpha, gamma, beta)
    y = jax.block_until_ready(y)

    # Pure-JAX reference check.
    ref = jnp.tanh(x * alpha) * gamma + beta
    assert y.shape == x.shape and y.dtype == x.dtype
    assert jnp.allclose(y, ref, atol=1e-5, rtol=1e-5)

    print("KERNEL_OK")
</pallas_src>

<mosaic_0001>
module attributes {stable_mosaic.version = 11 : i64} {
  func.func @_dyn_tanh_kernel(%arg0: i32, %arg1: memref<1x512xf32, #tpu.memory_space<vmem>>, %arg2: memref<3x512xf32, #tpu.memory_space<vmem>>, %arg3: memref<1x512xf32, #tpu.memory_space<vmem>>) attributes {dimension_semantics = [#tpu.dimension_semantics<parallel>], iteration_bounds = array<i64: 1>, scalar_prefetch = 0 : i64, scratch_operands = 0 : i64, tpu.core_type = #tpu.core_type<tc>, window_params = [{transform_indices = @transform_0, window_bounds = array<i64: 1, 512>}, {pipeline_mode = #tpu.pipeline_mode<synchronous>, transform_indices = @transform_1, window_bounds = array<i64: 3, 512>}, {transform_indices = @transform_2, window_bounds = array<i64: 1, 512>}]} {
    %c0 = arith.constant 0 : index
    %c0_0 = arith.constant 0 : index
    %0 = vector.load %arg1[%c0, %c0_0] : memref<1x512xf32, #tpu.memory_space<vmem>>, vector<1x512xf32>
    %c0_1 = arith.constant 0 : index
    %c0_2 = arith.constant 0 : index
    %1 = vector.load %arg2[%c0_1, %c0_2] : memref<3x512xf32, #tpu.memory_space<vmem>>, vector<1x512xf32>
    %c1 = arith.constant 1 : index
    %c0_3 = arith.constant 0 : index
    %2 = vector.load %arg2[%c1, %c0_3] : memref<3x512xf32, #tpu.memory_space<vmem>>, vector<1x512xf32>
    %c2 = arith.constant 2 : index
    %c0_4 = arith.constant 0 : index
    %3 = vector.load %arg2[%c2, %c0_4] : memref<3x512xf32, #tpu.memory_space<vmem>>, vector<1x512xf32>
    %4 = arith.mulf %0, %1 : vector<1x512xf32>
    %5 = math.tanh %4 : vector<1x512xf32>
    %6 = arith.mulf %5, %2 : vector<1x512xf32>
    %7 = arith.addf %6, %3 : vector<1x512xf32>
    %c0_5 = arith.constant 0 : index
    %c0_6 = arith.constant 0 : index
    %8 = vector.load %arg3[%c0_5, %c0_6] : memref<1x512xf32, #tpu.memory_space<vmem>>, vector<1x512xf32>
    tpu.vector_store %arg3[%c0_5, %c0_6], %7 {strides = array<i32>} : memref<1x512xf32, #tpu.memory_space<vmem>>, vector<1x512xf32>,
    return
  }
  func.func @transform_0(%arg0: i32) -> (i32, i32) {
    %c0_i32 = arith.constant 0 : i32
    %c0_i32_0 = arith.constant 0 : i32
    return %arg0, %c0_i32 : i32, i32
  }
  func.func @transform_1(%arg0: i32) -> (i32, i32) {
    %c0_i32 = arith.constant 0 : i32
    %c0_i32_0 = arith.constant 0 : i32
    %c0_i32_1 = arith.constant 0 : i32
    return %c0_i32, %c0_i32_0 : i32, i32
  }
  func.func @transform_2(%arg0: i32) -> (i32, i32) {
    %c0_i32 = arith.constant 0 : i32
    %c0_i32_0 = arith.constant 0 : i32
    return %arg0, %c0_i32 : i32, i32
  }
}

</mosaic_0001>

<bundles_post_ra>
// kernel: tpu_custom_call.1
= control target key start
LH: loop header
LB: loop body
LE: loop exit
PB: predicated region body
PF: predicated region fallthrough
CT: control target
= control target key end

     0   :  { %7 = vsyncpa [#allocation3], 0  ;;  %s198_s0 = inlined_call_operand.hbm [shape: f32[1,512], index: 0, kind: input, shape index: {}]   ;;  %s199_s1 = inlined_call_operand.hbm [shape: f32[3,512], index: 1, kind: input, shape index: {}]   ;;  %s200_s2 = inlined_call_operand.hbm [shape: f32[1,512], index: 2, kind: output, shape index: {}]  }
   0x1   :  { %8 = vsyncpa [#allocation6], 0 }
   0x2   :  { %9 = vsyncpa [#allocation4], 0  ;;  %s144_s9 = smov [#allocation2]   ;;  %s145_s11 = smov [#allocation5]  }
   0x3   :  { %s16_s10 = sshll.u32 %s144_s9, 4  ;;  %s26_s12 = sshll.u32 %s145_s11, 4  ;;  %s17_s10 = int_to_ptr.vmem [resolvable:$true] %s16_s10  ;;  %s27_s12 = int_to_ptr.vmem [resolvable:$true] %s26_s12 }
   0x4   :  { %s72_s15 = scalar_lea.hbm %s198_s0, 64 }
   0x5   :  { %p73_p0 = scmp.ne.s32.totalorder %s198_s0, %s72_s15  ;;  %p76_p1 = scmp.lt.u32.totalorder %s72_s15, %s198_s0 }
   0x7   :  { %p78_p2 = pnand %p76_p1, %p73_p0 }
   0x9   :  { %81 = shalt.err (!%p78_p2)
}
   0xa   :  { %s82_s20 = scalar_lea.vmem %s17_s10, 64  ;;  %p87_p4 = scmp.lt.s32.totalorder %s17_s10, %s17_s10 }
   0xb   :  { %p83_p3 = scmp.ne.s32.totalorder %s17_s10, %s82_s20  ;;  %p88_p5 = scmp.lt.s32.totalorder %s82_s20, %s82_s20 }
   0xd   :  { %p89_p6 = por %p88_p5, %p87_p4 }
   0xf   :  { %p90_p7 = pnand %p89_p6, %p83_p3 }
  0x11   :  { %93 = shalt.err (!%p90_p7)
}
  0x12   :  { %19 = dma.hbm_to_vmem [thread:$0]  %s198_s0, 64, %s17_s10, [#allocation3]  }
  0x13   :  { %s94_s25 = scalar_lea.hbm %s199_s1, 256 }
  0x14   :  { %p95_p8 = scmp.ne.s32.totalorder %s199_s1, %s94_s25  ;;  %p98_p9 = scmp.lt.u32.totalorder %s94_s25, %s199_s1 }
  0x16   :  { %p100_p10 = pnand %p98_p9, %p95_p8 }
  0x18   :  { %103 = shalt.err (!%p100_p10)
}
  0x19   :  { %s104_s30 = scalar_lea.vmem %s27_s12, 256  ;;  %p109_p12 = scmp.lt.s32.totalorder %s27_s12, %s27_s12 }
  0x1a   :  { %p105_p11 = scmp.ne.s32.totalorder %s27_s12, %s104_s30  ;;  %p110_p13 = scmp.lt.s32.totalorder %s104_s30, %s104_s30 }
  0x1c   :  { %p111_p0 = por %p110_p13, %p109_p12 }
  0x1e   :  { %p112_p1 = pnand %p111_p0, %p105_p11 }
  0x20   :  { %115 = shalt.err (!%p112_p1)
}
  0x21   :  { %29 = dma.hbm_to_vmem [thread:$0]  %s199_s1, 256, %s27_s12, [#allocation6]  }
  0x22   :  { %138 = dma.done.wait [#allocation3], 64  }
  0x23   :  { %139 = vsyncadd [#allocation3], 4294967232 }
  0x24   :  { %140 = dma.done.wait [#allocation6], 256  }
  0x25   :  { %141 = vsyncadd [#allocation6], 4294967040  ;;  %v36_v0 = vld [vmem:[#allocation2] sm:$0xf]  ;;  %v46_v4 = vlaneseq  ;;  %s146_s4 = smov [#allocation7]  }
  0x26   :  { %v37_v1 = vld [vmem:[#allocation5] ss:$4 sm:$0xf]  ;;  %v39_v3 = vld [vmem:[#allocation5 + $0x1] ss:$4 sm:$0xf] }
  0x27   :  { %v42_v2 = vmul.f32 %v37_v1, %v36_v0  ;;  %v41_v6 = vld [vmem:[#allocation5 + $0x2] ss:$4 sm:$0xf]  ;;  %s57_s5 = sshll.u32 %s146_s4, 4  ;;  %vm48_vm0 = vcmp.lt.s32.totalorder %v46_v4, 512  ;;  %s58_s5 = int_to_ptr.vmem [resolvable:$true] %s57_s5 }
  0x28   :  { %s116_s1 = scalar_lea.vmem %s58_s5, 64  ;;  %p121_p3 = scmp.lt.s32.totalorder %s58_s5, %s58_s5 }
  0x29   :  { %70 = vtanh.f32 %v42_v2  ;;  %p117_p2 = scmp.ne.s32.totalorder %s58_s5, %s116_s1  ;;  %p122_p4 = scmp.lt.s32.totalorder %s116_s1, %s116_s1 }
  0x2b   :  { %p123_p5 = por %p122_p4, %p121_p3 }
  0x2d   :  { %p124_p6 = pnand %p123_p5, %p117_p2 }
  0x33   :  { %v71_v5 = vpop.eup %70 }
  0x34   :  { %v44_v7 = vmul.f32 %v71_v5, %v39_v3 }
  0x36   :  { %v45_v8 = vadd.f32 %v44_v7, %v41_v6 }
  0x38   :  { %50 = vst.msk [vmem:[#allocation7] sm:$0xf] %vm48_vm0, %v45_v8 }
  0x39   :  { %127 = shalt.err (!%p124_p6)
}
  0x3a   :  { %s128_s8 = scalar_lea.hbm %s200_s2, 64 }
  0x3b   :  { %p129_p7 = scmp.ne.s32.totalorder %s200_s2, %s128_s8  ;;  %p132_p8 = scmp.lt.u32.totalorder %s128_s8, %s200_s2 }
  0x3d   :  { %p134_p9 = pnand %p132_p8, %p129_p7 }
  0x3f   :  { %137 = shalt.err (!%p134_p9)
}
  0x40   :  { %60 = dma.vmem_to_hbm [thread:$0]  %s58_s5, 64, %s200_s2, [#allocation4]  }
  0x41   :  { %142 = dma.done.wait [#allocation4], 64  }
  0x42   :  { %143 = vsyncadd [#allocation4], 4294967232 }
  0x43   :  { %64 = vsyncpa [#allocation3], 1 }
  0x44   :  { %65 = vsyncpa [#allocation6], 1 }
  0x45   :  { %66 = vsyncpa [#allocation4], 1 }

</bundles_post_ra>
